<compile_context>
chip_gen: v6e
topology: v6e:2x2x1
jax: 0.10.0
libtpu: 0.0.40
codegen_flags: <defaults>
</compile_context>

<pallas_src>
import math

import jax
import jax.numpy as jnp
from jax.experimental import pallas as pl
from jax.experimental.pallas import tpu as pltpu


# ----------------------------- kernels ------------------------------------ #

def _pe_add_kernel(x_ref, pe_ref, o_ref):
    # affinity=False: lane-dense streaming add.
    # x_ref: (ts, N*C), pe_ref: (ts, N*C)
    o_ref[...] = (x_ref[...] + pe_ref[...]).astype(o_ref.dtype)


def _pe_affinity_bd_kernel(x_ref, wbd_ref, pe_ref, o_ref):
    # affinity=True, small N*C: lane-dense matmul against a block-diagonal weight.
    # x_ref: (ts, N*C), wbd_ref: (N*C, N*C) = blockdiag(W.T x N), pe_ref: (ts, N*C) w/ bias fused
    y = jnp.dot(x_ref[...], wbd_ref[...], preferred_element_type=jnp.float32)
    o_ref[...] = (y + pe_ref[...]).astype(o_ref.dtype)


def _pe_affinity_rows_kernel(x_ref, w_ref, pe_ref, o_ref):
    # affinity=True fallback (large N*C): flattened (steps*nodes, C) rows, x @ W.T on the MXU.
    # x_ref: (tr, C), w_ref: (C, C) PyTorch (out, in) layout, pe_ref: (tr, C) w/ bias fused
    y = jax.lax.dot_general(
        x_ref[...], w_ref[...],
        dimension_numbers=(((1,), (1,)), ((), ())),   # x @ W.T
        preferred_element_type=jnp.float32,
    )
    o_ref[...] = (y + pe_ref[...]).astype(o_ref.dtype)


# ----------------------------- wrapper ------------------------------------- #

def make_pe_table(max_len, d_model, dtype=jnp.float32):
    """Sinusoidal table, identical to the PyTorch buffer (before unsqueeze)."""
    position = jnp.arange(max_len, dtype=jnp.float32)[:, None]            # (L, 1)
    div_term = jnp.exp(
        jnp.arange(0, d_model, 2, dtype=jnp.float32) * (-math.log(10000.0) / d_model)
    )                                                                     # (C/2,)
    angles = position * div_term                                          # (L, C/2)
    pe = jnp.zeros((max_len, d_model), jnp.float32)
    pe = pe.at[:, 0::2].set(jnp.sin(angles))
    pe = pe.at[:, 1::2].set(jnp.cos(angles))
    return pe.astype(dtype)


_TARGET_BLOCK_BYTES = 4 << 20           # ~4 MiB per input block
_VMEM_LIMIT_BYTES = 48 * 1024 * 1024    # safe on v7x (64 MiB phys); v5e/v6e have 128 MiB
_MAX_BLOCK_DIAG_NC = 256                # lane-dense block-diagonal weight only while it stays cheap


def _row_tile(rows, row_bytes, sublane, target_bytes=_TARGET_BLOCK_BYTES):
    """Row tile: multiple of the dtype's sublane packing, capped at ~target_bytes per block.
    Ragged last tiles are allowed (grid uses pl.cdiv)."""
    rows_padded = pl.cdiv(rows, sublane) * sublane
    cap = max(sublane, (target_bytes // max(row_bytes, 1)) // sublane * sublane)
    return min(rows_padded, cap)


def positional_encoding(x, pe_table, weight=None, bias=None):
    """Forward pass of tsl PositionalEncoding (dropout p=0.0, batch_first=True).

    x:        (B, S, N, C)
    pe_table: (max_len, C) sinusoidal buffer (float32)
    weight:   optional (C, C) affinity weight (PyTorch nn.Linear layout)
    bias:     optional (C,)  affinity bias
    """
    B, S, N, C = x.shape
    NC = N * C
    itemsize = jnp.dtype(x.dtype).itemsize
    sublane = max(8, 32 // itemsize)          # 8 for f32, 16 for bf16, 32 for int8/fp8
    pe = pe_table[:S].astype(jnp.float32)     # (S, C) == pe[:x.size(1)] squeezed

    compiler_params = pltpu.CompilerParams(
        dimension_semantics=("parallel", "parallel"),
        vmem_limit_bytes=_VMEM_LIMIT_BYTES,
    )

    # TODO(synk): dropout with p > 0 would need pltpu.prng_* inside the kernel;
    # the module default p=0.0 makes dropout the identity, so it is omitted.

    # Small (no-batch-axis) PE slab, broadcast over nodes once in the wrapper.
    pe_slab = jnp.broadcast_to(pe[:, None, :], (S, N, C)).reshape(S, NC)     # (S, N*C)

    if weight is None:
        # ---- affinity=False: lane-dense streaming add ---------------------- #
        pe_slab = pe_slab.astype(x.dtype)
        x3 = x.reshape(B, S, NC)
        ts = _row_tile(S, NC * itemsize, sublane)
        grid = (pl.cdiv(S, ts), B)             # rows OUTER, batch INNER -> PE re-used across b

        out3 = pl.pallas_call(
            _pe_add_kernel,
            out_shape=jax.ShapeDtypeStruct(x3.shape, x.dtype),
            grid_spec=pltpu.PrefetchScalarGridSpec(
                num_scalar_prefetch=0,
                grid=grid,
                in_specs=[
                    pl.BlockSpec((None, ts, NC), lambda r, b: (b, r, 0)),
                    pl.BlockSpec((ts, NC), lambda r, b: (r, 0)),   # independent of b: no re-DMA
                ],
                out_specs=pl.BlockSpec((None, ts, NC), lambda r, b: (b, r, 0)),
            ),
            compiler_params=compiler_params,
        )(x3, pe_slab)
        return out3.reshape(B, S, N, C)

    # ---- affinity=True ------------------------------------------------------ #
    if NC <= _MAX_BLOCK_DIAG_NC:
        # Lane-dense path: block-diagonal weight (N copies of W.T), bias fused into PE slab.
        w_bd = jnp.kron(jnp.eye(N, dtype=jnp.float32), weight.T.astype(jnp.float32))
        w_bd = w_bd.astype(x.dtype)                                        # (N*C, N*C)
        if bias is not None:
            pe_slab = pe_slab + jnp.tile(bias.astype(jnp.float32), N)[None, :]
        pe_slab = pe_slab.astype(x.dtype)

        x3 = x.reshape(B, S, NC)
        ts = _row_tile(S, NC * itemsize, sublane)
        grid = (pl.cdiv(S, ts), B)

        out3 = pl.pallas_call(
            _pe_affinity_bd_kernel,
            out_shape=jax.ShapeDtypeStruct(x3.shape, x.dtype),
            grid_spec=pltpu.PrefetchScalarGridSpec(
                num_scalar_prefetch=0,
                grid=grid,
                in_specs=[
                    pl.BlockSpec((None, ts, NC), lambda r, b: (b, r, 0)),
                    pl.BlockSpec((NC, NC), lambda r, b: (0, 0)),           # VMEM-resident weight
                    pl.BlockSpec((ts, NC), lambda r, b: (r, 0)),           # PE re-used across b
                ],
                out_specs=pl.BlockSpec((None, ts, NC), lambda r, b: (b, r, 0)),
            ),
            compiler_params=compiler_params,
        )(x3, w_bd, pe_slab)
        return out3.reshape(B, S, N, C)

    # Fallback for large N*C: flattened (steps*nodes, C) rows; weight stays (C, C).
    pe_rows = jnp.broadcast_to(pe[:, None, :], (S, N, C)).reshape(S * N, C)
    if bias is not None:
        pe_rows = pe_rows + bias.astype(jnp.float32)[None, :]
    pe_rows = pe_rows.astype(x.dtype)

    x2 = x.reshape(B, S * N, C)
    rows = S * N
    tr = _row_tile(rows, C * itemsize, sublane)
    grid = (pl.cdiv(rows, tr), B)

    out2 = pl.pallas_call(
        _pe_affinity_rows_kernel,
        out_shape=jax.ShapeDtypeStruct(x2.shape, x.dtype),
        grid_spec=pltpu.PrefetchScalarGridSpec(
            num_scalar_prefetch=0,
            grid=grid,
            in_specs=[
                pl.BlockSpec((None, tr, C), lambda r, b: (b, r, 0)),
                pl.BlockSpec((C, C), lambda r, b: (0, 0)),                 # VMEM-resident weight
                pl.BlockSpec((tr, C), lambda r, b: (r, 0)),                # PE re-used across b
            ],
            out_specs=pl.BlockSpec((None, tr, C), lambda r, b: (b, r, 0)),
        ),
        compiler_params=compiler_params,
    )(x2, weight.astype(x.dtype), pe_rows)
    return out2.reshape(B, S, N, C)


# ------------------------------ main --------------------------------------- #

if __name__ == "__main__":
    B, S, N, C = 2, 8, 4, 32        # batch, steps, nodes, d_model
    MAX_LEN = 64

    key = jax.random.PRNGKey(0)
    kx, kw, kb = jax.random.split(key, 3)

    x = jax.random.normal(kx, (B, S, N, C), dtype=jnp.float32)

    # Deterministic nn.Linear(d_model, d_model) init: U(-1/sqrt(C), 1/sqrt(C))
    bound = 1.0 / math.sqrt(C)
    weight = jax.random.uniform(kw, (C, C), jnp.float32, -bound, bound)
    bias = jax.random.uniform(kb, (C,), jnp.float32, -bound, bound)

    pe_table = make_pe_table(MAX_LEN, C)

    # --- Pallas kernel (affinity=True) ---
    out_affinity = positional_encoding(x, pe_table, weight, bias)
    jax.block_until_ready(out_affinity)

    # --- Pallas kernel (affinity=False) ---
    out_plain = positional_encoding(x, pe_table)
    jax.block_until_ready(out_plain)

    # --- pure-JAX reference (mirrors the PyTorch forward) ---
    pe_b = pe_table[:S][:, None, :]                       # (S, 1, C), like pe[:x.size(1)]
    ref_affinity = (jnp.einsum("bsnc,dc->bsnd", x, weight) + bias) + pe_b
    ref_plain = x + pe_b

    assert jnp.allclose(out_affinity, ref_affinity, rtol=1e-5, atol=1e-5), "affinity mismatch"
    assert jnp.allclose(out_plain, ref_plain, rtol=1e-5, atol=1e-5), "plain mismatch"

    print("KERNEL_OK")
</pallas_src>

<mosaic_0001>
module attributes {stable_mosaic.version = 11 : i64} {
  func.func @_pe_affinity_bd_kernel(%arg0: i32, %arg1: i32, %arg2: memref<1x8x128xf32, #tpu.memory_space<vmem>>, %arg3: memref<128x128xf32, #tpu.memory_space<vmem>>, %arg4: memref<8x128xf32, #tpu.memory_space<vmem>>, %arg5: memref<1x8x128xf32, #tpu.memory_space<vmem>>) attributes {dimension_semantics = [#tpu.dimension_semantics<parallel>, #tpu.dimension_semantics<parallel>], iteration_bounds = array<i64: 1, 2>, scalar_prefetch = 0 : i64, scratch_operands = 0 : i64, tpu.core_type = #tpu.core_type<tc>, window_params = [{transform_indices = @transform_0, window_bounds = array<i64: 1, 8, 128>}, {pipeline_mode = #tpu.pipeline_mode<synchronous>, transform_indices = @transform_1, window_bounds = array<i64: 128, 128>}, {transform_indices = @transform_2, window_bounds = array<i64: 8, 128>}, {transform_indices = @transform_3, window_bounds = array<i64: 1, 8, 128>}]} {
    %c0 = arith.constant 0 : index
    %c0_0 = arith.constant 0 : index
    %c0_1 = arith.constant 0 : index
    %0 = vector.load %arg2[%c0, %c0_0, %c0_1] : memref<1x8x128xf32, #tpu.memory_space<vmem>>, vector<1x8x128xf32>
    %1 = vector.shape_cast %0 : vector<1x8x128xf32> to vector<8x128xf32>
    %c0_2 = arith.constant 0 : index
    %c0_3 = arith.constant 0 : index
    %2 = vector.load %arg3[%c0_2, %c0_3] : memref<128x128xf32, #tpu.memory_space<vmem>>, vector<128x128xf32>
    %cst = arith.constant dense<0.000000e+00> : vector<8x128xf32>
    %3 = tpu.matmul %1, %2, %cst {dimension_numbers = #tpu.dot_dimension_numbers<[1], [0], [0], [1], [0, 0, 1, 1], [], []>} : vector<8x128xf32>, vector<128x128xf32>, vector<8x128xf32> -> vector<8x128xf32>
    %c0_4 = arith.constant 0 : index
    %c0_5 = arith.constant 0 : index
    %4 = vector.load %arg4[%c0_4, %c0_5] : memref<8x128xf32, #tpu.memory_space<vmem>>, vector<8x128xf32>
    %5 = arith.addf %3, %4 : vector<8x128xf32>
    %c0_6 = arith.constant 0 : index
    %c0_7 = arith.constant 0 : index
    %c0_8 = arith.constant 0 : index
    %6 = vector.load %arg5[%c0_6, %c0_7, %c0_8] : memref<1x8x128xf32, #tpu.memory_space<vmem>>, vector<1x8x128xf32>
    %7 = vector.shape_cast %6 : vector<1x8x128xf32> to vector<8x128xf32>
    %8 = vector.shape_cast %5 : vector<8x128xf32> to vector<1x8x128xf32>
    tpu.vector_store %arg5[%c0_6, %c0_7, %c0_8], %8 {strides = array<i32>} : memref<1x8x128xf32, #tpu.memory_space<vmem>>, vector<1x8x128xf32>,
    return
  }
  func.func @transform_0(%arg0: i32, %arg1: i32) -> (i32, i32, i32) {
    %c0_i32 = arith.constant 0 : i32
    %c0_i32_0 = arith.constant 0 : i32
    return %arg1, %arg0, %c0_i32 : i32, i32, i32
  }
  func.func @transform_1(%arg0: i32, %arg1: i32) -> (i32, i32) {
    %c0_i32 = arith.constant 0 : i32
    %c0_i32_0 = arith.constant 0 : i32
    %c0_i32_1 = arith.constant 0 : i32
    return %c0_i32, %c0_i32_0 : i32, i32
  }
  func.func @transform_2(%arg0: i32, %arg1: i32) -> (i32, i32) {
    %c0_i32 = arith.constant 0 : i32
    %c0_i32_0 = arith.constant 0 : i32
    return %arg0, %c0_i32 : i32, i32
  }
  func.func @transform_3(%arg0: i32, %arg1: i32) -> (i32, i32, i32) {
    %c0_i32 = arith.constant 0 : i32
    %c0_i32_0 = arith.constant 0 : i32
    return %arg1, %arg0, %c0_i32 : i32, i32, i32
  }
}

</mosaic_0001>

<bundles_post_ra>
// kernel: tpu_custom_call.1
= control target key start
LH: loop header
LB: loop body
LE: loop exit
PB: predicated region body
PF: predicated region fallthrough
CT: control target
= control target key end

     0   :  { %8 = vsyncpa [#allocation3], 0  ;;  %s979_s0 = inlined_call_operand.hbm [shape: f32[2,8,128], index: 0, kind: input, shape index: {}]   ;;  %s980_s1 = inlined_call_operand.hbm [shape: f32[128,128], index: 1, kind: input, shape index: {}]   ;;  %s981_s2 = inlined_call_operand.hbm [shape: f32[8,128], index: 2, kind: input, shape index: {}]   ;;  %s982_s3 = inlined_call_operand.hbm [shape: f32[2,8,128], index: 3, kind: output, shape index: {}]  }
   0x1   :  { %10 = vsyncpa [#allocation3 + $0x1], 0 }
   0x2   :  { %11 = vsyncpa [#allocation6], 0 }
   0x3   :  { %12 = vsyncpa [#allocation4], 0 }
   0x4   :  { %14 = vsyncpa [#allocation4 + $0x1], 0  ;;  %s792_s12 = smov 0   ;;  %s794_s13 = smov 0  }
   0x5   :  { %s796_s14 = smov 0   ;;  %s798_s15 = smov 0  }
   0x6   :  { %s800_s16 = smov 0   ;;  %s802_s17 = smov 0  }
   0x7 LB: > { %s442_s18 = sadd.s32 4294967295, %s762_s17   ;;  %s443_s19 = sadd.s32 4294967294, %s762_s17   ;;  %s762_s17 = sphi %s802_s17, %s20_s17   ;;  %s758_s16 = sphi %s800_s16, %s1002_s16   ;;  %s754_s15 = sphi %s798_s15, %s1001_s15   ;;  %s750_s14 = sphi %s796_s14, %s1000_s14   ;;  %s746_s13 = sphi %s794_s13, %s999_s13   ;;  %s742_s12 = sphi %s792_s12, %s998_s12  }
   0x8   : > { %p54_p0 = scmp.ne.s32.totalorder %s746_s13, %s742_s12  ;;  %p826_p1 = scmp.eq.s32.totalorder %s442_s18, 0 }
   0x9   : > { %p830_p2 = scmp.eq.s32.totalorder %s442_s18, 1  ;;  %p133_p3 = scmp.eq.s32.totalorder %s443_s19, 1 }
   0xa   : > { %s986_s20 = scalar_select %p826_p1, 1, 0 }
   0xb   : > { %p836_p4 = por %p826_p1, %p54_p0  ;;  %p444_p5 = scmp.ge.s32.totalorder %s762_s17, 1 }
   0xc   : > { %p841_p6 = por %p133_p3, %p54_p0  ;;  %p140_p7 = scmp.lt.s32.totalorder %s762_s17, 3 }
   0xd   : > { %s988_s22 = scalar_select %p836_p4, 1, 0 }
   0xe   : > { %s989_s23 = scalar_select %p841_p6, 1, 0 }
   0xf   : > { %p846_p8 = pnand %p444_p5, %p140_p7  ;;  %s764_s25 = smov [#allocation5]  }
  0x10   : > { %s152_s26 = sshll.u32 %s764_s25, 4  ;;  %s765_s28 = smov [#allocation7]   ;;  %s153_s26 = int_to_ptr.vmem [resolvable:$true] %s152_s26 }
  0x11   : > { %p523_p9 = pneg %p846_p8  ;;  %s168_s29 = sshll.u32 %s765_s28, 4  ;;  %s169_s29 = int_to_ptr.vmem [resolvable:$true] %s168_s29 }
  0x12   : > { %s609_s30 = scalar_lea.vmem %s153_s26, 2048  ;;  %p617_p5 = scmp.lt.s32.totalorder %s153_s26, %s153_s26 }
  0x13   : > { %p855_p11 = pnand %p523_p9, %p826_p1  ;;  %p610_p13 = scmp.ne.s32.totalorder %s153_s26, %s609_s30 }
  0x14   : > { %p618_p7 = scmp.lt.s32.totalorder %s609_s30, %s609_s30 }
  0x15   : > { %p600_p12 = pneg %p855_p11 }
  0x16   : > { %p619_p10 = por %p618_p7, %p617_p5 }
  0x17   : > { %p612_p0 = pnand %p610_p13, %p600_p12 }
  0x19   : > { %p613_p3 = pneg %p612_p0 }
  0x1b   : > { %p620_p9 = pnand %p619_p10, %p613_p3 }
  0x1d   : > { %623 = shalt.err (!%p620_p9)
}
  0x1e   : > { %s766_s4 = smov 128   ;;  %s767_s5 = smov 8  }
  0x1f   : > { %526 = dma.hbm_to_vmem [thread:$0]  (!%p855_p11), %s980_s1, 2048, %s153_s26, [#allocation6], %s766_s4, %s766_s4, %s767_s5  }
  0x20   : > { %s635_s8 = scalar_lea.vmem %s169_s29, 128  ;;  %p643_p1 = scmp.lt.s32.totalorder %s169_s29, %s169_s29 }
  0x21   : > { %p636_p6 = scmp.ne.s32.totalorder %s169_s29, %s635_s8  ;;  %p644_p4 = scmp.lt.s32.totalorder %s635_s8, %s635_s8 }
  0x23   : > { %p638_p13 = pnand %p636_p6, %p600_p12  ;;  %p645_p5 = por %p644_p4, %p643_p1 }
  0x25   : > { %p639_p0 = pneg %p638_p13 }
  0x27   : > { %p646_p10 = pnand %p645_p5, %p639_p0 }
  0x29   : > { %649 = shalt.err (!%p646_p10)
}
  0x2a   : > { %529 = dma.hbm_to_vmem [thread:$0]  (!%p855_p11), %s981_s2, 128, %s169_s29, [#allocation6]  }
  0x2b   : > { %s29_s11 = sadd.s32 1, %s758_s16  ;;  %s41_s18 = sadd.s32 1, %s750_s14 }
  0x2c   : > { %p30_p1 = scmp.ge.s32.totalorder %s29_s11, 2  ;;  %p48_p4 = scmp.ne.s32.totalorder %s750_s14, %s746_s13 }
  0x2d   : > { %p49_p6 = scmp.eq.s32.totalorder %s762_s17, 0  ;;  %p540_p12 = scmp.lt.s32.totalorder %s762_s17, 2 }
  0x2e   : > { %s1004_s11 = smov (%p30_p1, %s29_s11), 0  ;;  %p887_p7 = por %p830_p2, %p48_p4 }
  0x2f   : > { %p50_p3 = por %p49_p6, %p48_p4  ;;  %s36_s25 = ssub.s32 %s758_s16, %s1004_s11 }
  0x30   : > { %s179_s26 = sand.u32 1, %s750_s14   ;;  %p39_p9 = scmp.eq.s32.totalorder %s36_s25, 0 }
  0x31   : > { %s448_s27 = sshll.u32 %s179_s26, 3  ;;  %s449_s28 = sshll.u32 %s758_s16, 7 }
  0x32   : > { %s896_s29 = scalar_select %p39_p9, %s750_s14, %s41_s18  }
  0x33   : > { %s189_s5 = scalar_lea.hbm %s979_s0, %s449_s28  ;;  %s183_s6 = scalar_lea.vmem [#allocation2], %s448_s27 }
  0x34   : > { %s191_s7 = sshll.u32 %s183_s6, 4  ;;  %p903_p11 = pnand %p540_p12, %p50_p3  ;;  %s192_s7 = int_to_ptr.vmem [resolvable:$true] %s191_s7 }
  0x35   : > { %s180_s8 = scalar_lea.sflag [#allocation3], %s179_s26  ;;  %s663_s9 = scalar_lea.vmem %s192_s7, 128 }
  0x36   : > { %p652_p2 = pneg %p903_p11  ;;  %p664_p13 = scmp.ne.s32.totalorder %s192_s7, %s663_s9 }
  0x37   : > { %s768_s10 = smov [#allocation2]  }
  0x38   : > { %p666_p0 = pnand %p664_p13, %p652_p2  ;;  %s668_s18 = sshll.u32 %s768_s10, 4  ;;  %s669_s18 = int_to_ptr.vmem [resolvable:$false] %s668_s18 }
  0x39   : > { %s670_s25 = scalar_lea.vmem %s669_s18, 256  ;;  %p671_p10 = scmp.lt.s32.totalorder %s192_s7, %s669_s18 }
  0x3a   : > { %p667_p5 = pneg %p666_p0  ;;  %p672_p1 = scmp.lt.s32.totalorder %s670_s25, %s663_s9 }
  0x3c   : > { %p673_p4 = por %p672_p1, %p671_p10 }
  0x3e   : > { %p674_p6 = pnand %p673_p4, %p667_p5 }
  0x40   : > { %677 = shalt.err (!%p674_p6)
}
  0x41   : > { %533 = dma.hbm_to_vmem [thread:$0]  (!%p903_p11), %s189_s5, 128, %s192_s7, %s180_s8  }
  0x42   : > { %200 = sbr.rel (%p846_p8) target bundleno = 316 (0x13c), region = 32  ;;  %s914_s26 = sand.u32 (!%p846_p8), 1, %s746_s13  }
  0x43   : > { %s451_s27 = sshll.u32 (!%p846_p8), %s914_s26, 3  ;;  %s203_s28 = scalar_lea.sflag (!%p846_p8), [#allocation3], %s914_s26 }
  0x44   : > { %s920_s30 = scalar_lea.vmem (!%p846_p8), [#allocation2], %s451_s27  ;;  %p994_p12 = scmp.ne.s32.totalorder (!%p846_p8), %s988_s22, 0 }
  0x47   : > { %729 = dma.done.wait (%p994_p12), %s203_s28, 128  }
  0x48   : > { %731 = vsyncadd (%p994_p12), %s203_s28, 4294967168  ;;  %p995_p3 = scmp.ne.s32.totalorder %s986_s20, 0 }
  0x4a   : > { %733 = dma.done.wait (%p995_p3), [#allocation6], 2176  }
  0x4b   : > { %735 = vsyncadd (%p995_p3), [#allocation6], 4294965120  ;;  %v769_v0 = vmov 0.0   ;;  %vm770_vm0 = vmmov 0   ;;  %v253_v1 = vld [vmem:[#allocation5 + $0x78] sm:$0xff]  ;;  %v252_v2 = vld [vmem:[#allocation5 + $0x70] sm:$0xff] }
  0x4c   : > { %476 = vmatprep.subr.mxu0 %v769_v0  ;;  %508 = vmatprep.mubr.msk.f32.mxu0 %vm770_vm0, %v769_v0  ;;  %v251_v3 = vld [vmem:[#allocation5 + $0x68] sm:$0xff]  ;;  %v250_v4 = vld [vmem:[#allocation5 + $0x60] sm:$0xff]  ;;  %v249_v5 = vld [vmem:[#allocation5 + $0x58] sm:$0xff]  ;;  %s456_s20 = sshll.u32 %s754_s15, 7  ;;  %s236_s22 = scalar_lea.vmem [#allocation8], %s451_s27 }
  0x4d   : > { %477 = vmatpush3.msra.mxu0 %v253_v1  ;;  %v248_v6 = vld [vmem:[#allocation5 + $0x50] sm:$0xff]  ;;  %v247_v7 = vld [vmem:[#allocation5 + $0x48] sm:$0xff]  ;;  %v246_v8 = vld [vmem:[#allocation5 + $0x40] sm:$0xff]  ;;  %s341_s24 = sshll.u32 %s236_s22, 4  ;;  %s937_s6 = scalar_lea.hbm %s982_s3, %s456_s20  ;;  %s342_s24 = int_to_ptr.vmem [resolvable:$true] %s341_s24 }
  0x4e   : > { %478 = vmatprep.subr.mxu0 %v769_v0  ;;  %v245_v9 = vld [vmem:[#allocation5 + $0x38] sm:$0xff]  ;;  %v244_v10 = vld [vmem:[#allocation5 + $0x30] sm:$0xff]  ;;  %v243_v11 = vld [vmem:[#allocation5 + $0x28] sm:$0xff]  ;;  %s327_s7 = scalar_lea.sflag [#allocation4], %s914_s26  ;;  %s678_s21 = scalar_lea.vmem %s342_s24, 128 }
  0x4f   : > { %479 = vmatpush3.msra.mxu0 %v252_v2  ;;  %v242_v12 = vld [vmem:[#allocation5 + $0x20] sm:$0xff]  ;;  %v241_v13 = vld [vmem:[#allocation5 + $0x18] sm:$0xff]  ;;  %v240_v14 = vld [vmem:[#allocation5 + $0x10] sm:$0xff]  ;;  %p679_p8 = scmp.ne.s32.totalorder %s342_s24, %s678_s21  ;;  %s771_s15 = smov [#allocation8]  }
  0x50   : > { %480 = vmatprep.subr.mxu0 %v769_v0  ;;  %v239_v15 = vld [vmem:[#allocation5 + $0x8] sm:$0xff]  ;;  %v238_v16 = vld [vmem:[#allocation5] sm:$0xff]  ;;  %v237_v17 = vld [vmem:[%s920_s30] sm:$0xff]  ;;  %s682_s8 = sshll.u32 %s771_s15, 4  ;;  %s683_s8 = int_to_ptr.vmem [resolvable:$false] %s682_s8 }
  0x51   : > { %481 = vmatpush3.msra.mxu0 %v251_v3  ;;  %v254_v18 = vld [vmem:[#allocation7] sm:$0xff]  ;;  %p680_p9 = pnand %p679_p8, %p887_p7  ;;  %s684_s9 = scalar_lea.vmem %s683_s8, 256 }
  0x52   : > { %482 = vmatprep.subr.mxu0 %v769_v0  ;;  %p685_p2 = scmp.lt.s32.totalorder %s342_s24, %s683_s8  ;;  %p686_p13 = scmp.lt.s32.totalorder %s684_s9, %s678_s21 }
  0x53   : > { %483 = vmatpush3.msra.mxu0 %v250_v4  ;;  %p681_p11 = pneg %p680_p9 }
  0x54   : > { %484 = vmatprep.subr.mxu0 %v769_v0  ;;  %p687_p0 = por %p686_p13, %p685_p2 }
  0x55   : > { %485 = vmatpush3.msra.mxu0 %v249_v5 }
  0x56   : > { %486 = vmatprep.subr.mxu0 %v769_v0  ;;  %p688_p5 = pnand %p687_p0, %p681_p11 }
  0x57   : > { %487 = vmatpush3.msra.mxu0 %v248_v6 }
  0x58   : > { %488 = vmatprep.subr.mxu0 %v769_v0 }
  0x59   : > { %489 = vmatpush3.msra.mxu0 %v247_v7 }
  0x5a   : > { %490 = vmatprep.subr.mxu0 %v769_v0 }
  0x5b   : > { %491 = vmatpush3.msra.mxu0 %v246_v8 }
  0x5c   : > { %492 = vmatprep.subr.mxu0 %v769_v0 }
  0x5d   : > { %493 = vmatpush3.msra.mxu0 %v245_v9 }
  0x5e   : > { %494 = vmatprep.subr.mxu0 %v769_v0 }
  0x5f   : > { %495 = vmatpush3.msra.mxu0 %v244_v10 }
  0x60   : > { %496 = vmatprep.subr.mxu0 %v769_v0 }
  0x61   : > { %497 = vmatpush3.msra.mxu0 %v243_v11 }
  0x62   : > { %498 = vmatprep.subr.mxu0 %v769_v0 }
  0x63   : > { %499 = vmatpush3.msra.mxu0 %v242_v12 }
  0x64   : > { %500 = vmatprep.subr.mxu0 %v769_v0 }
  0x65   : > { %501 = vmatpush3.msra.mxu0 %v241_v13 }
  0x66   : > { %502 = vmatprep.subr.mxu0 %v769_v0 }
  0x67   : > { %503 = vmatpush3.msra.mxu0 %v240_v14 }
  0x68   : > { %504 = vmatprep.subr.mxu0 %v769_v0 }
  0x69   : > { %505 = vmatpush3.msra.mxu0 %v239_v15 }
  0x6a   : > { %506 = vmatprep.subr.mxu0 %v769_v0 }
  0x6b   : > { %507 = vmatpush3.msra.mxu0 %v238_v16 }
  0x6c   : > { %509 = vmatmul.mubr.f32.vlgmr.msra.gmra.mxu0 %v237_v17 }
 0x12c   : > { %v321_v19 = vpop.f32.mrf.mxu0 }
 0x12d   : > { %v322_v20 = vadd.f32 %v321_v19, %v254_v18 }
 0x12e   : > { %v510_v21 = vpop.f32.mrf.mxu0 }
 0x12f   : > { %325 = vst [vmem:[%s236_s22] sm:$0xff] %v322_v20 }
 0x130   : > { %691 = shalt.err (!%p688_p5)
}
 0x131   : > { %s692_s10 = scalar_lea.hbm %s937_s6, 128  ;;  %s696_s26 = scalar_lea.hbm %s982_s3, 256 }
 0x132   : > { %p693_p10 = scmp.ne.s32.totalorder %s937_s6, %s692_s10  ;;  %p697_p6 = scmp.lt.s32.totalorder %s937_s6, %s982_s3 }
 0x133   : > { %p698_p12 = scmp.lt.s32.totalorder %s696_s26, %s692_s10 }
 0x134   : > { %p694_p1 = pnand %p693_p10, %p887_p7 }
 0x135   : > { %p699_p3 = por %p698_p12, %p697_p6 }
 0x136   : > { %p695_p4 = pneg %p694_p1 }
 0x138   : > { %p700_p8 = pnand %p699_p3, %p695_p4 }
 0x13a   : > { %703 = shalt.err (!%p700_p8)
}
 0x13b   : > { %521 = dma.vmem_to_hbm [thread:$0]  (%p887_p7), %s342_s24, 128, %s937_s6, %s327_s7  }
 0x13c PF: > { %s353_s30 = sand.u32 1, %s742_s12   ;;  %p996_p9 = scmp.ne.s32.totalorder %s989_s23, 0 }
 0x13d   : > { %p997_p11 = scmp.ge.s32.totalorder %s762_s17, 2  ;;  %s354_s20 = scalar_lea.sflag [#allocation4], %s353_s30 }
 0x13f   : > { %p535_p2 = pnand %p997_p11, %p996_p9 }
 0x141   : > { %p536_p13 = pneg %p535_p2 }
 0x143   : > { %737 = dma.done.wait (%p536_p13), %s354_s20, 128  }
 0x144   : > { %739 = vsyncadd (%p536_p13), %s354_s20, 4294967168  ;;  %s20_s17 = sadd.s32 1, %s762_s17   ;;  %s998_s12 = smov %s746_s13 }
 0x145   : > { %p17_p0 = scmp.ge.s32.totalorder %s20_s17, 4   ;;  %s999_s13 = smov %s750_s14 }
 0x146   : > { %s1000_s14 = smov %s896_s29  ;;  %s1001_s15 = smov %s758_s16 }
 0x147   : > { %s1002_s16 = smov %s1004_s11  ;;  %19 = sbr.rel (!%p17_p0) target bundleno = 7 (0x7), region = 86 }
 0x14c   :  { %359 = vsyncpa [#allocation3], 1 }
 0x14d   :  { %361 = vsyncpa [#allocation3 + $0x1], 1 }
 0x14e   :  { %362 = vsyncpa [#allocation6], 1 }
 0x14f   :  { %363 = vsyncpa [#allocation4], 1 }
 0x150   :  { %365 = vsyncpa [#allocation4 + $0x1], 1 }

</bundles_post_ra>
